<compile_context>
chip_gen: v6e
topology: v6e:2x2x1
jax: 0.10.0
libtpu: 0.0.40
codegen_flags: <defaults>
</compile_context>

<pallas_src>
import math
from functools import partial

import jax
import jax.numpy as jnp
from jax.experimental import pallas as pl
from jax.experimental.pallas import tpu as pltpu

_LANE = 128
# Above the 16/32 MiB scoped defaults, below v7x's 64 MiB physical VMEM.
_VMEM_LIMIT_BYTES = 48 * 1024 * 1024


def _maybe_cast(x, dtype):
    return x if dtype is None else x.astype(dtype)


# ---------------------------------------------------------------------------
# Kernels
# ---------------------------------------------------------------------------

def _write_kernel(retrieved_ref, prev_mem_ref, wt_concat_ref, b_concat_ref,
                  out_ref, *, mxu_dtype):
    """self_attention=False path: Linear(cat([retrieved, prev_mem], -1))."""
    H = retrieved_ref.shape[-1]
    r = _maybe_cast(retrieved_ref[...], mxu_dtype)
    m = _maybe_cast(prev_mem_ref[...], mxu_dtype)
    # cat([r, m]) @ W_T == r @ W_T[:H] + m @ W_T[H:]   (slice on the Ref)
    out = (jnp.dot(r, _maybe_cast(wt_concat_ref[:H, :], mxu_dtype),
                   preferred_element_type=jnp.float32)
           + jnp.dot(m, _maybe_cast(wt_concat_ref[H:, :], mxu_dtype),
                     preferred_element_type=jnp.float32)
           + b_concat_ref[...])
    out_ref[...] = out.astype(out_ref.dtype)


def _write_sa_kernel(self_ctrl_ref, controls_ref, memories_ref, retrieved_ref,
                     wt_control_ref, b_control_ref, w_attn_ref, b_attn_ref,
                     wt_concat_ref, b_concat_ref, out_ref, *, mxu_dtype):
    """self_attention=True path."""
    H = retrieved_ref.shape[-1]

    # self_control = Linear_control(controls[-1])            -> [tb, H] (f32)
    sc = (jnp.dot(_maybe_cast(self_ctrl_ref[...], mxu_dtype),
                  _maybe_cast(wt_control_ref[...], mxu_dtype),
                  preferred_element_type=jnp.float32)
          + b_control_ref[...])

    # fold the (H -> 1) attention weight into self_control once -> [tb, H]
    scw = sc * w_attn_ref[...]

    controls = controls_ref[...]                              # [S, tb, H]
    memories = memories_ref[...]                              # [S, tb, H]

    # logits[s, b, 0] = sum_h scw[b, h] * controls[s, b, h] + b_attn
    logits = (jnp.sum(scw[None, :, :] * controls, axis=-1, keepdims=True)
              + b_attn_ref[0, 0])                             # [S, tb, 1]

    # softmax over the step axis S (lane-dense [S, tb, 1] throughout)
    mx = jnp.max(logits, axis=0, keepdims=True)
    e = jnp.exp(logits - mx)
    denom = jnp.sum(e, axis=0, keepdims=True)
    p = e * pl.reciprocal(denom, approx=True)                 # [S, tb, 1]

    attn_mem = jnp.sum(p * memories, axis=0)                  # [tb, H] (f32)
    prev_mem = memories[-1]                                   # [tb, H]

    # Linear_concat(cat([retrieved, prev_mem, attn_mem], -1)); slice W on Ref.
    out = (jnp.dot(_maybe_cast(retrieved_ref[...], mxu_dtype),
                   _maybe_cast(wt_concat_ref[:H, :], mxu_dtype),
                   preferred_element_type=jnp.float32)
           + jnp.dot(_maybe_cast(prev_mem, mxu_dtype),
                     _maybe_cast(wt_concat_ref[H:2 * H, :], mxu_dtype),
                     preferred_element_type=jnp.float32)
           + jnp.dot(_maybe_cast(attn_mem, mxu_dtype),
                     _maybe_cast(wt_concat_ref[2 * H:, :], mxu_dtype),
                     preferred_element_type=jnp.float32)
           + b_concat_ref[...])
    out_ref[...] = out.astype(out_ref.dtype)


# ---------------------------------------------------------------------------
# Wrappers
# ---------------------------------------------------------------------------

def write_unit_forward(params, retrieved, memories_stack,
                       controls_stack=None, self_ctrl=None, *,
                       self_attention=False, block_b=128, mxu_dtype=None):
    """JAX/Pallas equivalent of WriteUnit.forward.

    retrieved      : [B, H]
    memories_stack : [S, B, H]   (stack of all memories; memories[-1] is prev)
    controls_stack : [S, B, H]   (stack of controls[:-1]; SA path only)
    self_ctrl      : [B, H]      (controls[-1]; SA path only)
    mxu_dtype      : None (f32 matmuls) or jnp.bfloat16 (v6e/v7x fast path).
    """
    B, H = retrieved.shape
    assert H % _LANE == 0, "hidden_dim must be a multiple of 128 (lane axis)"
    tb = B if B <= block_b else block_b
    assert tb == B or tb % 8 == 0, "batch tile must be a multiple of 8"
    grid = (pl.cdiv(B, tb),)

    compiler_params = pltpu.CompilerParams(
        dimension_semantics=("parallel",),      # v7x: batch split over 2 TCs
        vmem_limit_bytes=_VMEM_LIMIT_BYTES)
    out_shape = jax.ShapeDtypeStruct((B, H), jnp.float32)
    row_spec = pl.BlockSpec((tb, H), lambda i: (i, 0))

    if not self_attention:
        prev_mem = memories_stack[-1]
        cost = pl.CostEstimate(
            flops=2 * B * (2 * H) * H + B * H,
            transcendentals=0,
            bytes_accessed=4 * (3 * B * H + 2 * H * H + H))
        return pl.pallas_call(
            partial(_write_kernel, mxu_dtype=mxu_dtype),
            out_shape=out_shape,
            grid=grid,
            in_specs=[row_spec,                                   # retrieved
                      row_spec,                                   # prev_mem
                      pl.BlockSpec((2 * H, H), lambda i: (0, 0)),  # wt_concat
                      pl.BlockSpec((1, H), lambda i: (0, 0))],     # b_concat
            out_specs=row_spec,
            compiler_params=compiler_params,
            cost_estimate=cost,
        )(retrieved, prev_mem, params["wt_concat"], params["b_concat"])

    # --- self-attention path ------------------------------------------------
    assert controls_stack is not None and self_ctrl is not None
    S = controls_stack.shape[0]
    assert S >= 1, "self-attention path needs at least one prior control"
    assert memories_stack.shape[0] == S

    stack_spec = pl.BlockSpec((S, tb, H), lambda i: (0, i, 0))
    cost = pl.CostEstimate(
        flops=2 * B * H * H + 2 * B * (3 * H) * H + 6 * S * B * H,
        transcendentals=S * B + B,
        bytes_accessed=4 * (2 * S * B * H + 3 * B * H + 4 * H * H + 4 * H + 1))
    return pl.pallas_call(
        partial(_write_sa_kernel, mxu_dtype=mxu_dtype),
        out_shape=out_shape,
        grid=grid,
        in_specs=[row_spec,                                       # self_ctrl
                  stack_spec,                                     # controls[:-1]
                  stack_spec,                                     # memories
                  row_spec,                                       # retrieved
                  pl.BlockSpec((H, H), lambda i: (0, 0)),         # wt_control
                  pl.BlockSpec((1, H), lambda i: (0, 0)),         # b_control
                  pl.BlockSpec((1, H), lambda i: (0, 0)),         # w_attn
                  pl.BlockSpec(memory_space=pltpu.MemorySpace.SMEM),  # b_attn
                  pl.BlockSpec((3 * H, H), lambda i: (0, 0)),     # wt_concat
                  pl.BlockSpec((1, H), lambda i: (0, 0))],        # b_concat
        out_specs=row_spec,
        compiler_params=compiler_params,
        cost_estimate=cost,
    )(self_ctrl, controls_stack, memories_stack, retrieved,
      params["wt_control"], params["b_control"],
      params["w_attn"], params["b_attn"],
      params["wt_concat"], params["b_concat"])


def write_unit_forward_from_lists(params, memories, retrieved, controls,
                                  self_attention=False, **kw):
    """Convenience wrapper taking the torch-style lists.

    NOTE: in a real MAC loop keep the recurrence state in pre-allocated
    [S_max, B, H] device buffers updated in place (lax.dynamic_update_slice /
    input_output_aliases) instead of restacking Python lists every step —
    the stacks dominate HBM bytes of this memory-bound kernel.
    """
    memories_stack = jnp.stack(memories, axis=0)
    if not self_attention:
        return write_unit_forward(params, retrieved, memories_stack,
                                  self_attention=False, **kw)
    # TODO(synk): guard the first MAC step (len(controls) == 1 -> empty stack).
    controls_stack = jnp.stack(controls[:-1], axis=0)
    return write_unit_forward(params, retrieved, memories_stack,
                              controls_stack, controls[-1],
                              self_attention=True, **kw)


# ---------------------------------------------------------------------------
# Deterministic parameter init (xavier-uniform linear layers)
# ---------------------------------------------------------------------------

def _xavier_linear(key, in_dim, out_dim):
    kw, kb = jax.random.split(key)
    bound_w = math.sqrt(6.0 / (in_dim + out_dim))
    w = jax.random.uniform(kw, (out_dim, in_dim), jnp.float32,
                           -bound_w, bound_w)
    bound_b = 1.0 / math.sqrt(in_dim)
    b = jax.random.uniform(kb, (out_dim,), jnp.float32, -bound_b, bound_b)
    return w, b


def make_params(key, hidden_dim, self_attention):
    keys = jax.random.split(key, 3)
    params = {}
    if self_attention:
        w_ctrl, b_ctrl = _xavier_linear(keys[0], hidden_dim, hidden_dim)
        w_attn, b_attn = _xavier_linear(keys[1], hidden_dim, 1)
        w_cat, b_cat = _xavier_linear(keys[2], 3 * hidden_dim, hidden_dim)
        params["wt_control"] = w_ctrl.T                       # [H, H]
        params["b_control"] = b_ctrl.reshape(1, hidden_dim)   # [1, H]
        params["w_attn"] = w_attn                             # [1, H]
        params["b_attn"] = b_attn.reshape(1, 1)               # [1, 1]
        params["wt_concat"] = w_cat.T                         # [3H, H]
        params["b_concat"] = b_cat.reshape(1, hidden_dim)     # [1, H]
    else:
        w_cat, b_cat = _xavier_linear(keys[2], 2 * hidden_dim, hidden_dim)
        params["wt_concat"] = w_cat.T                         # [2H, H]
        params["b_concat"] = b_cat.reshape(1, hidden_dim)     # [1, H]
    return params


# ---------------------------------------------------------------------------
# Pure-JAX reference (mirrors the torch code exactly) for a sanity check
# ---------------------------------------------------------------------------

def reference_forward(params, retrieved, memories_stack,
                      controls_stack=None, self_ctrl=None,
                      self_attention=False):
    prev_mem = memories_stack[-1]
    if self_attention:
        sc = self_ctrl @ params["wt_control"] + params["b_control"]
        controls_cat = jnp.transpose(controls_stack, (1, 2, 0))   # [B, H, S]
        attn = sc[:, :, None] * controls_cat                      # [B, H, S]
        attn = (jnp.transpose(attn, (0, 2, 1)) @ params["w_attn"].T
                + params["b_attn"][0, 0])                         # [B, S, 1]
        attn = jax.nn.softmax(attn, axis=1)
        attn = jnp.transpose(attn, (0, 2, 1))                     # [B, 1, S]
        memories_cat = jnp.transpose(memories_stack, (1, 2, 0))   # [B, H, S]
        attn_mem = jnp.sum(attn * memories_cat, axis=2)           # [B, H]
        concat = jnp.concatenate([retrieved, prev_mem, attn_mem], axis=1)
    else:
        concat = jnp.concatenate([retrieved, prev_mem], axis=1)
    return concat @ params["wt_concat"] + params["b_concat"]


# ---------------------------------------------------------------------------
# Demo
# ---------------------------------------------------------------------------

if __name__ == "__main__":
    B, H, S = 16, 128, 4        # batch, hidden_dim (lane-dense), prior steps
    key = jax.random.PRNGKey(0)
    k_mem, k_ctrl, k_sc, k_ret, k_p1, k_p2 = jax.random.split(key, 6)

    memories_stack = jax.random.normal(k_mem, (S, B, H), jnp.float32)
    controls_stack = jax.random.normal(k_ctrl, (S, B, H), jnp.float32)
    self_ctrl = jax.random.normal(k_sc, (B, H), jnp.float32)
    retrieved = jax.random.normal(k_ret, (B, H), jnp.float32)

    ok = True

    # --- self_attention=False, f32 MXU --------------------------------------
    params = make_params(k_p1, H, False)
    out = write_unit_forward(params, retrieved, memories_stack,
                             self_attention=False)
    out = jax.block_until_ready(out)
    ref = reference_forward(params, retrieved, memories_stack,
                            self_attention=False)
    ok &= bool(jnp.allclose(out, ref, atol=1e-4, rtol=1e-4))

    # --- self_attention=True, f32 MXU ---------------------------------------
    params_sa = make_params(k_p2, H, True)
    out = write_unit_forward(params_sa, retrieved, memories_stack,
                             controls_stack, self_ctrl, self_attention=True)
    out = jax.block_until_ready(out)
    ref = reference_forward(params_sa, retrieved, memories_stack,
                            controls_stack, self_ctrl, self_attention=True)
    # tolerance covers the approximate EUP reciprocal in the softmax
    ok &= bool(jnp.allclose(out, ref, atol=2e-2, rtol=2e-2))

    # --- self_attention=True, bf16 MXU operands (v6e/v7x fast path) ---------
    out_bf16 = write_unit_forward(params_sa, retrieved, memories_stack,
                                  controls_stack, self_ctrl,
                                  self_attention=True,
                                  mxu_dtype=jnp.bfloat16)
    out_bf16 = jax.block_until_ready(out_bf16)
    ok &= bool(jnp.allclose(out_bf16, ref, atol=1e-1, rtol=1e-1))

    if ok:
        print("KERNEL_OK")
</pallas_src>

<mosaic_0001>
module attributes {stable_mosaic.version = 11 : i64} {
  func.func @_write_kernel(%arg0: i32, %arg1: memref<16x128xf32, #tpu.memory_space<vmem>>, %arg2: memref<16x128xf32, #tpu.memory_space<vmem>>, %arg3: memref<256x128xf32, #tpu.memory_space<vmem>>, %arg4: memref<1x128xf32, #tpu.memory_space<vmem>>, %arg5: memref<16x128xf32, #tpu.memory_space<vmem>>) attributes {dimension_semantics = [#tpu.dimension_semantics<parallel>], iteration_bounds = array<i64: 1>, scalar_prefetch = 0 : i64, scratch_operands = 0 : i64, tpu.core_type = #tpu.core_type<tc>, window_params = [{transform_indices = @transform_0, window_bounds = array<i64: 16, 128>}, {transform_indices = @transform_1, window_bounds = array<i64: 16, 128>}, {pipeline_mode = #tpu.pipeline_mode<synchronous>, transform_indices = @transform_2, window_bounds = array<i64: 256, 128>}, {pipeline_mode = #tpu.pipeline_mode<synchronous>, transform_indices = @transform_3, window_bounds = array<i64: 1, 128>}, {transform_indices = @transform_4, window_bounds = array<i64: 16, 128>}]} {
    %c0 = arith.constant 0 : index
    %c0_0 = arith.constant 0 : index
    %0 = vector.load %arg1[%c0, %c0_0] : memref<16x128xf32, #tpu.memory_space<vmem>>, vector<16x128xf32>
    %c0_1 = arith.constant 0 : index
    %c0_2 = arith.constant 0 : index
    %1 = vector.load %arg2[%c0_1, %c0_2] : memref<16x128xf32, #tpu.memory_space<vmem>>, vector<16x128xf32>
    %c0_3 = arith.constant 0 : index
    %c0_4 = arith.constant 0 : index
    %2 = vector.load %arg3[%c0_3, %c0_4] : memref<256x128xf32, #tpu.memory_space<vmem>>, vector<128x128xf32>
    %cst = arith.constant dense<0.000000e+00> : vector<16x128xf32>
    %3 = tpu.matmul %0, %2, %cst {dimension_numbers = #tpu.dot_dimension_numbers<[1], [0], [0], [1], [0, 0, 1, 1], [], []>} : vector<16x128xf32>, vector<128x128xf32>, vector<16x128xf32> -> vector<16x128xf32>
    %c128 = arith.constant 128 : index
    %c0_5 = arith.constant 0 : index
    %4 = vector.load %arg3[%c128, %c0_5] : memref<256x128xf32, #tpu.memory_space<vmem>>, vector<128x128xf32>
    %cst_6 = arith.constant dense<0.000000e+00> : vector<16x128xf32>
    %5 = tpu.matmul %1, %4, %cst_6 {dimension_numbers = #tpu.dot_dimension_numbers<[1], [0], [0], [1], [0, 0, 1, 1], [], []>} : vector<16x128xf32>, vector<128x128xf32>, vector<16x128xf32> -> vector<16x128xf32>
    %6 = arith.addf %3, %5 : vector<16x128xf32>
    %c0_7 = arith.constant 0 : index
    %c0_8 = arith.constant 0 : index
    %7 = vector.load %arg4[%c0_7, %c0_8] : memref<1x128xf32, #tpu.memory_space<vmem>>, vector<1x128xf32>
    %8 = vector.broadcast %7 : vector<1x128xf32> to vector<16x128xf32>
    %9 = arith.addf %6, %8 : vector<16x128xf32>
    %c0_9 = arith.constant 0 : index
    %c0_10 = arith.constant 0 : index
    %10 = vector.load %arg5[%c0_9, %c0_10] : memref<16x128xf32, #tpu.memory_space<vmem>>, vector<16x128xf32>
    tpu.vector_store %arg5[%c0_9, %c0_10], %9 {strides = array<i32>} : memref<16x128xf32, #tpu.memory_space<vmem>>, vector<16x128xf32>,
    return
  }
  func.func @transform_0(%arg0: i32) -> (i32, i32) {
    %c0_i32 = arith.constant 0 : i32
    %c0_i32_0 = arith.constant 0 : i32
    return %arg0, %c0_i32 : i32, i32
  }
  func.func @transform_1(%arg0: i32) -> (i32, i32) {
    %c0_i32 = arith.constant 0 : i32
    %c0_i32_0 = arith.constant 0 : i32
    return %arg0, %c0_i32 : i32, i32
  }
  func.func @transform_2(%arg0: i32) -> (i32, i32) {
    %c0_i32 = arith.constant 0 : i32
    %c0_i32_0 = arith.constant 0 : i32
    %c0_i32_1 = arith.constant 0 : i32
    return %c0_i32, %c0_i32_0 : i32, i32
  }
  func.func @transform_3(%arg0: i32) -> (i32, i32) {
    %c0_i32 = arith.constant 0 : i32
    %c0_i32_0 = arith.constant 0 : i32
    %c0_i32_1 = arith.constant 0 : i32
    return %c0_i32, %c0_i32_0 : i32, i32
  }
  func.func @transform_4(%arg0: i32) -> (i32, i32) {
    %c0_i32 = arith.constant 0 : i32
    %c0_i32_0 = arith.constant 0 : i32
    return %arg0, %c0_i32 : i32, i32
  }
}

</mosaic_0001>

<bundles_post_ra>
// kernel: tpu_custom_call.1
= control target key start
LH: loop header
LB: loop body
LE: loop exit
PB: predicated region body
PF: predicated region fallthrough
CT: control target
= control target key end

     0   :  { %9 = vsyncpa [#allocation3], 0  ;;  %s531_s0 = inlined_call_operand.hbm [shape: f32[16,128], index: 0, kind: input, shape index: {}]   ;;  %s532_s1 = inlined_call_operand.hbm [shape: f32[16,128], index: 1, kind: input, shape index: {}]   ;;  %s533_s2 = inlined_call_operand.hbm [shape: f32[256,128], index: 2, kind: input, shape index: {}]   ;;  %s534_s3 = inlined_call_operand.vmem [shape: f32[1,128], index: 3, kind: input, shape index: {}]   ;;  %s535_s4 = inlined_call_operand.hbm [shape: f32[16,128], index: 4, kind: output, shape index: {}]  }
   0x1   :  { %10 = vsyncpa [#allocation6], 0 }
   0x2   :  { %11 = vsyncpa [#allocation4], 0  ;;  %s473_s15 = smov [#allocation5]   ;;  %s474_s17 = smov [#allocation2]  }
   0x3   :  { %s29_s16 = sshll.u32 %s473_s15, 4  ;;  %s17_s18 = sshll.u32 %s474_s17, 4  ;;  %s30_s16 = int_to_ptr.vmem [resolvable:$true] %s29_s16  ;;  %s18_s18 = int_to_ptr.vmem [resolvable:$true] %s17_s18 }
   0x4   :  { %s395_s19 = scalar_lea.vmem %s30_s16, 256  ;;  %p400_p1 = scmp.lt.s32.totalorder %s30_s16, %s30_s16 }
   0x5   :  { %p396_p0 = scmp.ne.s32.totalorder %s30_s16, %s395_s19  ;;  %p401_p2 = scmp.lt.s32.totalorder %s395_s19, %s395_s19 }
   0x7   :  { %p402_p3 = por %p401_p2, %p400_p1 }
   0x9   :  { %p403_p4 = pnand %p402_p3, %p396_p0 }
   0xb   :  { %406 = shalt.err (!%p403_p4)
}
   0xc   :  { %s475_s20 = smov 128   ;;  %s476_s21 = smov 8  }
   0xd   :  { %35 = dma.hbm_to_vmem [thread:$0]  %s532_s1, 256, %s30_s16, [#allocation6], %s475_s20, %s475_s20, %s476_s21  }
   0xe   :  { %s415_s24 = scalar_lea.vmem %s18_s18, 256  ;;  %p420_p6 = scmp.lt.s32.totalorder %s18_s18, %s18_s18 }
   0xf   :  { %p416_p5 = scmp.ne.s32.totalorder %s18_s18, %s415_s24  ;;  %p421_p7 = scmp.lt.s32.totalorder %s415_s24, %s415_s24 }
  0x11   :  { %p422_p8 = por %p421_p7, %p420_p6 }
  0x13   :  { %p423_p9 = pnand %p422_p8, %p416_p5 }
  0x15   :  { %426 = shalt.err (!%p423_p9)
}
  0x16   :  { %23 = dma.hbm_to_vmem [thread:$0]  %s531_s0, 256, %s18_s18, [#allocation3], %s475_s20, %s475_s20, %s476_s21  }
  0x17   :  { %s477_s27 = smov [#allocation7]  }
  0x18   :  { %s41_s28 = sshll.u32 %s477_s27, 4  ;;  %s42_s28 = int_to_ptr.vmem [resolvable:$true] %s41_s28 }
  0x19   :  { %s435_s29 = scalar_lea.vmem %s42_s28, 4096  ;;  %p440_p11 = scmp.lt.s32.totalorder %s42_s28, %s42_s28 }
  0x1a   :  { %p436_p10 = scmp.ne.s32.totalorder %s42_s28, %s435_s29  ;;  %p441_p12 = scmp.lt.s32.totalorder %s435_s29, %s435_s29 }
  0x1c   :  { %p442_p13 = por %p441_p12, %p440_p11 }
  0x1e   :  { %p443_p0 = pnand %p442_p13, %p436_p10 }
  0x20   :  { %446 = shalt.err (!%p443_p0)
}
  0x21   :  { %47 = dma.hbm_to_vmem [thread:$0]  %s533_s2, 4096, %s42_s28, [#allocation6], %s475_s20, %s475_s20, %s476_s21  }
  0x22   :  { %467 = dma.done.wait [#allocation3], 256  }
  0x23   :  { %468 = vsyncadd [#allocation3], 4294967040 }
  0x24   :  { %469 = dma.done.wait [#allocation6], 4352  }
  0x25   :  { %470 = vsyncadd [#allocation6], 4294962944  ;;  %v94_v0 = vld [vmem:[#allocation7 + $0xf8] sm:$0xff]  ;;  %v93_v2 = vld [vmem:[#allocation7 + $0xf0] sm:$0xff]  ;;  %s478_s5 = smov [#allocation8]  }
  0x26   :  { %v78_v1 = vld [vmem:[#allocation7 + $0x78] sm:$0xff]  ;;  %311 = vmatprep.subr.mxu0 %v94_v0  ;;  %v77_v3 = vld [vmem:[#allocation7 + $0x70] sm:$0xff]  ;;  %v92_v4 = vld [vmem:[#allocation7 + $0xe8] sm:$0xff]  ;;  %s261_s6 = sshll.u32 %s478_s5, 4  ;;  %s262_s6 = int_to_ptr.vmem [resolvable:$true] %s261_s6 }
  0x27   :  { %346 = vmatprep.subr.mxu1 %v78_v1  ;;  %312 = vmatpush3.msra.mxu0 %v94_v0  ;;  %v76_v5 = vld [vmem:[#allocation7 + $0x68] sm:$0xff]  ;;  %v91_v6 = vld [vmem:[#allocation7 + $0xe0] sm:$0xff]  ;;  %v90_v8 = vld [vmem:[#allocation7 + $0xd8] sm:$0xff]  ;;  %s447_s7 = scalar_lea.vmem %s262_s6, 256  ;;  %p452_p2 = scmp.lt.s32.totalorder %s262_s6, %s262_s6 }
  0x28   :  { %347 = vmatpush3.msra.mxu1 %v78_v1  ;;  %313 = vmatprep.subr.mxu0 %v93_v2  ;;  %v75_v7 = vld [vmem:[#allocation7 + $0x60] sm:$0xff]  ;;  %v74_v9 = vld [vmem:[#allocation7 + $0x58] sm:$0xff]  ;;  %v89_v10 = vld [vmem:[#allocation7 + $0xd0] sm:$0xff]  ;;  %p448_p1 = scmp.ne.s32.totalorder %s262_s6, %s447_s7  ;;  %p453_p3 = scmp.lt.s32.totalorder %s447_s7, %s447_s7 }
  0x29   :  { %348 = vmatprep.subr.mxu1 %v77_v3  ;;  %314 = vmatpush3.msra.mxu0 %v93_v2  ;;  %v73_v11 = vld [vmem:[#allocation7 + $0x50] sm:$0xff]  ;;  %v88_v12 = vld [vmem:[#allocation7 + $0xc8] sm:$0xff]  ;;  %v87_v14 = vld [vmem:[#allocation7 + $0xc0] sm:$0xff] }
  0x2a   :  { %349 = vmatpush3.msra.mxu1 %v77_v3  ;;  %315 = vmatprep.subr.mxu0 %v92_v4  ;;  %v72_v13 = vld [vmem:[#allocation7 + $0x48] sm:$0xff]  ;;  %v71_v15 = vld [vmem:[#allocation7 + $0x40] sm:$0xff]  ;;  %v86_v16 = vld [vmem:[#allocation7 + $0xb8] sm:$0xff]  ;;  %p454_p4 = por %p453_p3, %p452_p2 }
  0x2b   :  { %350 = vmatprep.subr.mxu1 %v76_v5  ;;  %316 = vmatpush3.msra.mxu0 %v92_v4  ;;  %v70_v17 = vld [vmem:[#allocation7 + $0x38] sm:$0xff]  ;;  %v85_v18 = vld [vmem:[#allocation7 + $0xb0] sm:$0xff]  ;;  %v84_v20 = vld [vmem:[#allocation7 + $0xa8] sm:$0xff] }
  0x2c   :  { %351 = vmatpush3.msra.mxu1 %v76_v5  ;;  %317 = vmatprep.subr.mxu0 %v91_v6  ;;  %v69_v19 = vld [vmem:[#allocation7 + $0x30] sm:$0xff]  ;;  %v68_v21 = vld [vmem:[#allocation7 + $0x28] sm:$0xff]  ;;  %v83_v22 = vld [vmem:[#allocation7 + $0xa0] sm:$0xff]  ;;  %p455_p5 = pnand %p454_p4, %p448_p1 }
  0x2d   :  { %352 = vmatprep.subr.mxu1 %v75_v7  ;;  %318 = vmatpush3.msra.mxu0 %v91_v6  ;;  %v67_v23 = vld [vmem:[#allocation7 + $0x20] sm:$0xff]  ;;  %v82_v24 = vld [vmem:[#allocation7 + $0x98] sm:$0xff]  ;;  %v81_v26 = vld [vmem:[#allocation7 + $0x90] sm:$0xff] }
  0x2e   :  { %353 = vmatpush3.msra.mxu1 %v75_v7  ;;  %319 = vmatprep.subr.mxu0 %v90_v8  ;;  %v66_v25 = vld [vmem:[#allocation7 + $0x18] sm:$0xff]  ;;  %v65_v27 = vld [vmem:[#allocation7 + $0x10] sm:$0xff]  ;;  %v80_v28 = vld [vmem:[#allocation7 + $0x88] sm:$0xff] }
  0x2f   :  { %354 = vmatprep.subr.mxu1 %v74_v9  ;;  %320 = vmatpush3.msra.mxu0 %v90_v8  ;;  %v64_v29 = vld [vmem:[#allocation7 + $0x8] sm:$0xff]  ;;  %v79_v30 = vld [vmem:[#allocation7 + $0x80] sm:$0xff]  ;;  %v61_v32 = vld [vmem:[#allocation5] sm:$0xff] }
  0x30   :  { %355 = vmatpush3.msra.mxu1 %v74_v9  ;;  %321 = vmatprep.subr.mxu0 %v89_v10  ;;  %v63_v31 = vld [vmem:[#allocation7] sm:$0xff]  ;;  %v62_v34 = vld [vmem:[#allocation5 + $0x8] sm:$0xff]  ;;  %v60_v35 = vld [vmem:[#allocation2 + $0x8] sm:$0xff] }
  0x31   :  { %356 = vmatprep.subr.mxu1 %v73_v11  ;;  %322 = vmatpush3.msra.mxu0 %v89_v10  ;;  %v59_v33 = vld [vmem:[#allocation2] sm:$0xff] }
  0x32   :  { %357 = vmatpush3.msra.mxu1 %v73_v11  ;;  %323 = vmatprep.subr.mxu0 %v88_v12  ;;  %v274_v38 = vld [vmem:[%s534_s3] ss:$0 sm:$0xff] }
  0x33   :  { %358 = vmatprep.subr.mxu1 %v72_v13  ;;  %324 = vmatpush3.msra.mxu0 %v88_v12 }
  0x34   :  { %359 = vmatpush3.msra.mxu1 %v72_v13  ;;  %325 = vmatprep.subr.mxu0 %v87_v14 }
  0x35   :  { %360 = vmatprep.subr.mxu1 %v71_v15  ;;  %326 = vmatpush3.msra.mxu0 %v87_v14 }
  0x36   :  { %361 = vmatpush3.msra.mxu1 %v71_v15  ;;  %327 = vmatprep.subr.mxu0 %v86_v16 }
  0x37   :  { %362 = vmatprep.subr.mxu1 %v70_v17  ;;  %328 = vmatpush3.msra.mxu0 %v86_v16 }
  0x38   :  { %363 = vmatpush3.msra.mxu1 %v70_v17  ;;  %329 = vmatprep.subr.mxu0 %v85_v18 }
  0x39   :  { %364 = vmatprep.subr.mxu1 %v69_v19  ;;  %330 = vmatpush3.msra.mxu0 %v85_v18 }
  0x3a   :  { %365 = vmatpush3.msra.mxu1 %v69_v19  ;;  %331 = vmatprep.subr.mxu0 %v84_v20 }
  0x3b   :  { %366 = vmatprep.subr.mxu1 %v68_v21  ;;  %332 = vmatpush3.msra.mxu0 %v84_v20 }
  0x3c   :  { %367 = vmatpush3.msra.mxu1 %v68_v21  ;;  %333 = vmatprep.subr.mxu0 %v83_v22 }
  0x3d   :  { %368 = vmatprep.subr.mxu1 %v67_v23  ;;  %334 = vmatpush3.msra.mxu0 %v83_v22 }
  0x3e   :  { %369 = vmatpush3.msra.mxu1 %v67_v23  ;;  %335 = vmatprep.subr.mxu0 %v82_v24 }
  0x3f   :  { %370 = vmatprep.subr.mxu1 %v66_v25  ;;  %336 = vmatpush3.msra.mxu0 %v82_v24 }
  0x40   :  { %371 = vmatpush3.msra.mxu1 %v66_v25  ;;  %337 = vmatprep.subr.mxu0 %v81_v26 }
  0x41   :  { %372 = vmatprep.subr.mxu1 %v65_v27  ;;  %338 = vmatpush3.msra.mxu0 %v81_v26 }
  0x42   :  { %373 = vmatpush3.msra.mxu1 %v65_v27  ;;  %339 = vmatprep.subr.mxu0 %v80_v28 }
  0x43   :  { %374 = vmatprep.subr.mxu1 %v64_v29  ;;  %340 = vmatpush3.msra.mxu0 %v80_v28 }
  0x44   :  { %375 = vmatpush3.msra.mxu1 %v64_v29  ;;  %341 = vmatprep.subr.mxu0 %v79_v30 }
  0x45   :  { %376 = vmatprep.subr.mxu1 %v63_v31  ;;  %342 = vmatpush3.msra.mxu0 %v79_v30 }
  0x46   :  { %343 = vmatprep.mubr.f32.mxu0 %v61_v32  ;;  %377 = vmatpush3.msra.mxu1 %v63_v31 }
  0x47   :  { %378 = vmatprep.mubr.f32.mxu1 %v59_v33  ;;  %344 = vmatmul.mubr.f32.vlgmr.msra.gmra.mxu0 %v62_v34 }
  0x48   :  { %379 = vmatmul.mubr.f32.vlgmr.msra.gmra.mxu1 %v60_v35 }
 0x107   :  { %v345_v36 = vpop.f32.mrf.mxu0 }
 0x108   :  { %v380_v37 = vpop.f32.mrf.mxu1 }
 0x109   :  { %v242_v39 = vadd.f32 %v380_v37, %v345_v36  ;;  %v161_v40 = vpop.f32.mrf.mxu0 }
 0x10a   :  { %v236_v41 = vpop.f32.mrf.mxu1 }
 0x10b   :  { %v253_v42 = vadd.f32 %v274_v38, %v242_v39  ;;  %v237_v43 = vadd.f32 %v236_v41, %v161_v40 }
 0x10d   :  { %255 = vst [vmem:[#allocation8 + $0x8] sm:$0xff] %v253_v42  ;;  %v252_v44 = vadd.f32 %v274_v38, %v237_v43 }
 0x10f   :  { %254 = vst [vmem:[#allocation8] sm:$0xff] %v252_v44 }
 0x110   :  { %458 = shalt.err (!%p455_p5)
}
 0x111   :  { %267 = dma.vmem_to_hbm [thread:$0]  %s262_s6, 256, %s535_s4, [#allocation4], %s475_s20, %s475_s20, %s476_s21  }
 0x112   :  { %471 = dma.done.wait [#allocation4], 256  }
 0x113   :  { %472 = vsyncadd [#allocation4], 4294967040 }
 0x114   :  { %271 = vsyncpa [#allocation3], 1 }
 0x115   :  { %272 = vsyncpa [#allocation6], 1 }
 0x116   :  { %273 = vsyncpa [#allocation4], 1 }

</bundles_post_ra>
